<compile_context>
chip_gen: v7x
topology: tpu7x:2x2x1
jax: 0.10.0
libtpu: 0.0.40
codegen_flags: <defaults>
</compile_context>

<pallas_src>
import math
import functools

import jax
import jax.numpy as jnp
from jax.experimental import pallas as pl
from jax.experimental.pallas import tpu as pltpu

LANE = 128  # TPU lane (minor-axis) width


def _round_up(n, m):
    return (n + m - 1) // m * m


def fcnet_kernel(*refs, n_layers):
    """refs = (x_ref, w0, b0, w1, b1, ..., w_{L-1}, b_{L-1}, o_ref)

    x_ref : (TB, D)       one row-tile of the flattened input (D unpadded, full dim)
    w_i   : (K_i, Npad_i) pre-transposed bf16 weights (constant index map -> resident)
    b_i   : (1, Npad_i)   zero-padded f32 biases
    o_ref : (TB, Cpad)    lane-dense (128-multiple) output tile; real classes sliced in wrapper
    """
    x_ref = refs[0]
    o_ref = refs[-1]
    h = x_ref[...]
    for i in range(n_layers):
        w_ref = refs[1 + 2 * i]
        b_ref = refs[2 + 2 * i]
        # bf16 x bf16 -> f32 accumulate on the MXU; bias add + ReLU in f32.
        h = jnp.dot(h.astype(jnp.bfloat16), w_ref[...],
                    preferred_element_type=jnp.float32) + b_ref[...]
        h = jnp.maximum(h, 0.0)  # ReLU after every layer (incl. the last), per the module
    o_ref[...] = h.astype(o_ref.dtype)


def prepare_params(params):
    """One-time parameter prep (NOT per forward call):
       * transpose PyTorch-style (out, in) weights to (in, out),
       * zero-pad out dims (and in dims of layers > 0) to a multiple of 128 lanes,
       * cast weights to bfloat16 (biases stay f32 so bias-add/ReLU stay f32)."""
    prepared = []
    for idx, (w, b) in enumerate(params):
        wt = w.T  # (in, out)
        kin, nout = wt.shape
        # First layer's K stays the true flatten dim (matches the unpadded x block);
        # later layers' K equals the previous layer's padded N.
        kpad = kin if idx == 0 else _round_up(kin, LANE)
        npad = _round_up(nout, LANE)
        wt = jnp.pad(wt, ((0, kpad - kin), (0, npad - nout))).astype(jnp.bfloat16)
        bp = jnp.pad(b, (0, npad - nout)).reshape(1, npad).astype(jnp.float32)
        prepared.append((wt, bp))
    return prepared


def _pick_row_tile(B):
    """Row tile for the batch grid axis.
       * B < 16: one full-batch block (nothing worth sharding; block == full dim is legal).
       * B >= 16: >= 2 grid steps so v7x's second TensorCore gets work, tile capped at
         256 rows (f32 activations at larger tiles start spilling vregs)."""
    if B < 16:
        return B
    tb = _round_up(-(-B // 2), 8)   # ceil(B/2), sublane-aligned
    return min(tb, 256)


def _vmem_budget_bytes(prepared, tb, d_in, out_pad):
    """Estimated VMEM footprint: Pallas double-buffers every block (including the
    constant-index-map weights), plus headroom for the unrolled per-layer activations."""
    weight_bytes = sum(w.size * w.dtype.itemsize + b.size * b.dtype.itemsize
                       for w, b in prepared)
    io_bytes = tb * d_in * 4 + tb * out_pad * 4
    act_bytes = tb * max(w.shape[1] for w, _ in prepared) * 4
    return 2 * weight_bytes + 2 * io_bytes + 4 * act_bytes


def fcnet_forward(x, prepared, classes):
    """x: (B, C, H, W) float32. prepared: output of prepare_params. Returns (B, classes)."""
    B = x.shape[0]
    xf = x.reshape(B, -1)                      # the module's x.view(B, -1); NO feature pad
    D = xf.shape[1]
    assert prepared[0][0].shape[0] == D, "prepared params don't match input flatten dim"

    n_layers = len(prepared)
    out_pad = prepared[-1][0].shape[1]

    tb = _pick_row_tile(B)
    b_pad = _round_up(B, tb)
    if b_pad != B:
        # Zero rows keep tiles large and sublane-dense; sliced off below.
        xf = jnp.pad(xf, ((0, b_pad - B), (0, 0)))
    grid = (b_pad // tb,)

    x_spec = pl.BlockSpec((tb, D), lambda i: (i, 0))
    o_spec = pl.BlockSpec((tb, out_pad), lambda i: (i, 0))
    wb_specs = []
    flat_wb = []
    for wt, bp in prepared:
        wb_specs.append(pl.BlockSpec(wt.shape, lambda i: (0, 0)))
        wb_specs.append(pl.BlockSpec(bp.shape, lambda i: (0, 0)))
        flat_wb.extend((wt, bp))

    # Explicit VMEM budget sized to the real footprint (weights double-buffered), with
    # 2x headroom, floored at 32 MiB and capped at v7x's 64 MiB physical VMEM.
    need = _vmem_budget_bytes(prepared, tb, D, out_pad)
    vmem_limit = int(min(max(2 * need, 32 << 20), 64 << 20))
    # TODO(synk): for layer_size in the multi-K range where resident weights alone exceed
    # ~half of v7x's 64 MiB VMEM, fall back to a K/N-tiled per-layer emit_pipeline.

    kernel = functools.partial(fcnet_kernel, n_layers=n_layers)

    o = pl.pallas_call(
        kernel,
        out_shape=jax.ShapeDtypeStruct((b_pad, out_pad), x.dtype),
        grid_spec=pltpu.PrefetchScalarGridSpec(
            num_scalar_prefetch=0,
            grid=grid,
            in_specs=[x_spec] + wb_specs,
            out_specs=o_spec,
        ),
        compiler_params=pltpu.CompilerParams(
            dimension_semantics=("parallel",),
            vmem_limit_bytes=vmem_limit),
    )(xf, *flat_wb)

    return o[:B, :classes]


def reference_fcnet(x, params):
    """Pure-JAX f32 reference matching the PyTorch forward (ReLU on every layer)."""
    B = x.shape[0]
    h = x.reshape(B, -1)
    for w, b in params:
        h = jnp.maximum(
            jnp.dot(h, w.T, precision=jax.lax.Precision.HIGHEST) + b, 0.0)
    return h


def init_params(key, input_size, channels, num_layers, layer_size, classes):
    """Deterministic init mimicking nn.Linear defaults (uniform +-1/sqrt(fan_in)).
    Layer list mirrors FCNet: [in->L, (num_layers-1)x L->L, L->classes]."""
    sizes = [(input_size ** 2 * channels, layer_size)]
    sizes += [(layer_size, layer_size)] * (num_layers - 1)
    sizes += [(layer_size, classes)]
    params = []
    keys = jax.random.split(key, 2 * len(sizes))
    for idx, (fan_in, fan_out) in enumerate(sizes):
        bound = 1.0 / math.sqrt(fan_in)
        w = jax.random.uniform(keys[2 * idx], (fan_out, fan_in), jnp.float32, -bound, bound)
        b = jax.random.uniform(keys[2 * idx + 1], (fan_out,), jnp.float32, -bound, bound)
        params.append((w, b))
    return params


if __name__ == "__main__":
    # Small shapes consistent with the module: input_size=16, channels=4 -> flatten 1024,
    # num_layers=3, layer_size=32, classes=10, batch=2.
    B, C, IMG = 2, 4, 16
    NUM_LAYERS, LAYER_SIZE, CLASSES = 3, 32, 10

    root = jax.random.PRNGKey(0)
    k_params, k_x = jax.random.split(root)
    params = init_params(k_params, IMG, C, NUM_LAYERS, LAYER_SIZE, CLASSES)
    prepared = prepare_params(params)  # one-time transpose + lane padding + bf16 cast

    x = jax.random.normal(k_x, (B, C, IMG, IMG), jnp.float32)

    out = fcnet_forward(x, prepared, CLASSES)
    out = jax.block_until_ready(out)

    ref = reference_fcnet(x, params)
    assert out.shape == (B, CLASSES)
    # bf16 weights/activations on the MXU diverge from the f32 HIGHEST-precision reference;
    # tolerance loosened accordingly (values here are O(1), observed error << 5e-2).
    assert jnp.allclose(out, ref, atol=5e-2, rtol=5e-2), "mismatch vs reference"

    # TODO(synk): forward_generator (layer-by-layer Python generator) has no Pallas
    # equivalent; only forward() semantics are implemented.
    print("KERNEL_OK")
</pallas_src>

<mosaic_0001>
module attributes {stable_mosaic.version = 11 : i64} {
  func.func @fcnet_kernel(%arg0: i32, %arg1: memref<2x1024xf32, #tpu.memory_space<vmem>>, %arg2: memref<1024x128xbf16, #tpu.memory_space<vmem>>, %arg3: memref<1x128xf32, #tpu.memory_space<vmem>>, %arg4: memref<128x128xbf16, #tpu.memory_space<vmem>>, %arg5: memref<1x128xf32, #tpu.memory_space<vmem>>, %arg6: memref<128x128xbf16, #tpu.memory_space<vmem>>, %arg7: memref<1x128xf32, #tpu.memory_space<vmem>>, %arg8: memref<128x128xbf16, #tpu.memory_space<vmem>>, %arg9: memref<1x128xf32, #tpu.memory_space<vmem>>, %arg10: memref<2x128xf32, #tpu.memory_space<vmem>>) attributes {dimension_semantics = [#tpu.dimension_semantics<parallel>], iteration_bounds = array<i64: 1>, scalar_prefetch = 0 : i64, scratch_operands = 0 : i64, tpu.core_type = #tpu.core_type<tc>, window_params = [{transform_indices = @transform_0, window_bounds = array<i64: 2, 1024>}, {pipeline_mode = #tpu.pipeline_mode<synchronous>, transform_indices = @transform_1, window_bounds = array<i64: 1024, 128>}, {pipeline_mode = #tpu.pipeline_mode<synchronous>, transform_indices = @transform_2, window_bounds = array<i64: 1, 128>}, {pipeline_mode = #tpu.pipeline_mode<synchronous>, transform_indices = @transform_3, window_bounds = array<i64: 128, 128>}, {pipeline_mode = #tpu.pipeline_mode<synchronous>, transform_indices = @transform_4, window_bounds = array<i64: 1, 128>}, {pipeline_mode = #tpu.pipeline_mode<synchronous>, transform_indices = @transform_5, window_bounds = array<i64: 128, 128>}, {pipeline_mode = #tpu.pipeline_mode<synchronous>, transform_indices = @transform_6, window_bounds = array<i64: 1, 128>}, {pipeline_mode = #tpu.pipeline_mode<synchronous>, transform_indices = @transform_7, window_bounds = array<i64: 128, 128>}, {pipeline_mode = #tpu.pipeline_mode<synchronous>, transform_indices = @transform_8, window_bounds = array<i64: 1, 128>}, {transform_indices = @transform_9, window_bounds = array<i64: 2, 128>}]} {
    %c0 = arith.constant 0 : index
    %c0_0 = arith.constant 0 : index
    %0 = vector.load %arg1[%c0, %c0_0] : memref<2x1024xf32, #tpu.memory_space<vmem>>, vector<2x1024xf32>
    %1 = arith.truncf %0 : vector<2x1024xf32> to vector<2x1024xbf16>
    %c0_1 = arith.constant 0 : index
    %c0_2 = arith.constant 0 : index
    %2 = vector.load %arg2[%c0_1, %c0_2] : memref<1024x128xbf16, #tpu.memory_space<vmem>>, vector<1024x128xbf16>
    %cst = arith.constant dense<0.000000e+00> : vector<2x128xf32>
    %3 = tpu.matmul %1, %2, %cst {dimension_numbers = #tpu.dot_dimension_numbers<[1], [0], [0], [1], [0, 0, 1, 1], [], []>} : vector<2x1024xbf16>, vector<1024x128xbf16>, vector<2x128xf32> -> vector<2x128xf32>
    %c0_3 = arith.constant 0 : index
    %c0_4 = arith.constant 0 : index
    %4 = vector.load %arg3[%c0_3, %c0_4] : memref<1x128xf32, #tpu.memory_space<vmem>>, vector<1x128xf32>
    %5 = vector.broadcast %4 : vector<1x128xf32> to vector<2x128xf32>
    %6 = arith.addf %3, %5 : vector<2x128xf32>
    %cst_5 = arith.constant 0.000000e+00 : f32
    %7 = vector.broadcast %cst_5 : f32 to vector<2x128xf32>
    %8 = arith.maximumf %6, %7 : vector<2x128xf32>
    %9 = arith.truncf %8 : vector<2x128xf32> to vector<2x128xbf16>
    %c0_6 = arith.constant 0 : index
    %c0_7 = arith.constant 0 : index
    %10 = vector.load %arg4[%c0_6, %c0_7] : memref<128x128xbf16, #tpu.memory_space<vmem>>, vector<128x128xbf16>
    %cst_8 = arith.constant dense<0.000000e+00> : vector<2x128xf32>
    %11 = tpu.matmul %9, %10, %cst_8 {dimension_numbers = #tpu.dot_dimension_numbers<[1], [0], [0], [1], [0, 0, 1, 1], [], []>} : vector<2x128xbf16>, vector<128x128xbf16>, vector<2x128xf32> -> vector<2x128xf32>
    %c0_9 = arith.constant 0 : index
    %c0_10 = arith.constant 0 : index
    %12 = vector.load %arg5[%c0_9, %c0_10] : memref<1x128xf32, #tpu.memory_space<vmem>>, vector<1x128xf32>
    %13 = vector.broadcast %12 : vector<1x128xf32> to vector<2x128xf32>
    %14 = arith.addf %11, %13 : vector<2x128xf32>
    %cst_11 = arith.constant 0.000000e+00 : f32
    %15 = vector.broadcast %cst_11 : f32 to vector<2x128xf32>
    %16 = arith.maximumf %14, %15 : vector<2x128xf32>
    %17 = arith.truncf %16 : vector<2x128xf32> to vector<2x128xbf16>
    %c0_12 = arith.constant 0 : index
    %c0_13 = arith.constant 0 : index
    %18 = vector.load %arg6[%c0_12, %c0_13] : memref<128x128xbf16, #tpu.memory_space<vmem>>, vector<128x128xbf16>
    %cst_14 = arith.constant dense<0.000000e+00> : vector<2x128xf32>
    %19 = tpu.matmul %17, %18, %cst_14 {dimension_numbers = #tpu.dot_dimension_numbers<[1], [0], [0], [1], [0, 0, 1, 1], [], []>} : vector<2x128xbf16>, vector<128x128xbf16>, vector<2x128xf32> -> vector<2x128xf32>
    %c0_15 = arith.constant 0 : index
    %c0_16 = arith.constant 0 : index
    %20 = vector.load %arg7[%c0_15, %c0_16] : memref<1x128xf32, #tpu.memory_space<vmem>>, vector<1x128xf32>
    %21 = vector.broadcast %20 : vector<1x128xf32> to vector<2x128xf32>
    %22 = arith.addf %19, %21 : vector<2x128xf32>
    %cst_17 = arith.constant 0.000000e+00 : f32
    %23 = vector.broadcast %cst_17 : f32 to vector<2x128xf32>
    %24 = arith.maximumf %22, %23 : vector<2x128xf32>
    %25 = arith.truncf %24 : vector<2x128xf32> to vector<2x128xbf16>
    %c0_18 = arith.constant 0 : index
    %c0_19 = arith.constant 0 : index
    %26 = vector.load %arg8[%c0_18, %c0_19] : memref<128x128xbf16, #tpu.memory_space<vmem>>, vector<128x128xbf16>
    %cst_20 = arith.constant dense<0.000000e+00> : vector<2x128xf32>
    %27 = tpu.matmul %25, %26, %cst_20 {dimension_numbers = #tpu.dot_dimension_numbers<[1], [0], [0], [1], [0, 0, 1, 1], [], []>} : vector<2x128xbf16>, vector<128x128xbf16>, vector<2x128xf32> -> vector<2x128xf32>
    %c0_21 = arith.constant 0 : index
    %c0_22 = arith.constant 0 : index
    %28 = vector.load %arg9[%c0_21, %c0_22] : memref<1x128xf32, #tpu.memory_space<vmem>>, vector<1x128xf32>
    %29 = vector.broadcast %28 : vector<1x128xf32> to vector<2x128xf32>
    %30 = arith.addf %27, %29 : vector<2x128xf32>
    %cst_23 = arith.constant 0.000000e+00 : f32
    %31 = vector.broadcast %cst_23 : f32 to vector<2x128xf32>
    %32 = arith.maximumf %30, %31 : vector<2x128xf32>
    %c0_24 = arith.constant 0 : index
    %c0_25 = arith.constant 0 : index
    %33 = vector.load %arg10[%c0_24, %c0_25] : memref<2x128xf32, #tpu.memory_space<vmem>>, vector<2x128xf32>
    tpu.vector_store %arg10[%c0_24, %c0_25], %32 {strides = array<i32>} : memref<2x128xf32, #tpu.memory_space<vmem>>, vector<2x128xf32>,
    return
  }
  func.func @transform_0(%arg0: i32) -> (i32, i32) {
    %c0_i32 = arith.constant 0 : i32
    %c0_i32_0 = arith.constant 0 : i32
    return %arg0, %c0_i32 : i32, i32
  }
  func.func @transform_1(%arg0: i32) -> (i32, i32) {
    %c0_i32 = arith.constant 0 : i32
    %c0_i32_0 = arith.constant 0 : i32
    %c0_i32_1 = arith.constant 0 : i32
    return %c0_i32, %c0_i32_0 : i32, i32
  }
  func.func @transform_2(%arg0: i32) -> (i32, i32) {
    %c0_i32 = arith.constant 0 : i32
    %c0_i32_0 = arith.constant 0 : i32
    %c0_i32_1 = arith.constant 0 : i32
    return %c0_i32, %c0_i32_0 : i32, i32
  }
  func.func @transform_3(%arg0: i32) -> (i32, i32) {
    %c0_i32 = arith.constant 0 : i32
    %c0_i32_0 = arith.constant 0 : i32
    %c0_i32_1 = arith.constant 0 : i32
    return %c0_i32, %c0_i32_0 : i32, i32
  }
  func.func @transform_4(%arg0: i32) -> (i32, i32) {
    %c0_i32 = arith.constant 0 : i32
    %c0_i32_0 = arith.constant 0 : i32
    %c0_i32_1 = arith.constant 0 : i32
    return %c0_i32, %c0_i32_0 : i32, i32
  }
  func.func @transform_5(%arg0: i32) -> (i32, i32) {
    %c0_i32 = arith.constant 0 : i32
    %c0_i32_0 = arith.constant 0 : i32
    %c0_i32_1 = arith.constant 0 : i32
    return %c0_i32, %c0_i32_0 : i32, i32
  }
  func.func @transform_6(%arg0: i32) -> (i32, i32) {
    %c0_i32 = arith.constant 0 : i32
    %c0_i32_0 = arith.constant 0 : i32
    %c0_i32_1 = arith.constant 0 : i32
    return %c0_i32, %c0_i32_0 : i32, i32
  }
  func.func @transform_7(%arg0: i32) -> (i32, i32) {
    %c0_i32 = arith.constant 0 : i32
    %c0_i32_0 = arith.constant 0 : i32
    %c0_i32_1 = arith.constant 0 : i32
    return %c0_i32, %c0_i32_0 : i32, i32
  }
  func.func @transform_8(%arg0: i32) -> (i32, i32) {
    %c0_i32 = arith.constant 0 : i32
    %c0_i32_0 = arith.constant 0 : i32
    %c0_i32_1 = arith.constant 0 : i32
    return %c0_i32, %c0_i32_0 : i32, i32
  }
  func.func @transform_9(%arg0: i32) -> (i32, i32) {
    %c0_i32 = arith.constant 0 : i32
    %c0_i32_0 = arith.constant 0 : i32
    return %arg0, %c0_i32 : i32, i32
  }
}

</mosaic_0001>

<bundles_post_ra>
// kernel: tpu_custom_call.1
= control target key start
LH: loop header
LB: loop body
LE: loop exit
PB: predicated region body
PF: predicated region fallthrough
CT: control target
= control target key end

     0   :  { %14 = vsyncpa [#allocation3], 0  ;;  %s1892_s0 = inlined_call_operand.hbm [shape: f32[2,1024], index: 0, kind: input, shape index: {}]   ;;  %s1893_s1 = inlined_call_operand.hbm [shape: bf16[1024,128], index: 1, kind: input, shape index: {}]   ;;  %s1894_s2 = inlined_call_operand.vmem [shape: f32[1,128], index: 2, kind: input, shape index: {}]   ;;  %s1895_s3 = inlined_call_operand.hbm [shape: bf16[128,128], index: 3, kind: input, shape index: {}]   ;;  %s1896_s4 = inlined_call_operand.vmem [shape: f32[1,128], index: 4, kind: input, shape index: {}]   ;;  %s1897_s5 = inlined_call_operand.hbm [shape: bf16[128,128], index: 5, kind: input, shape index: {}]   ;;  %s1898_s6 = inlined_call_operand.vmem [shape: f32[1,128], index: 6, kind: input, shape index: {}]   ;;  %s1899_s7 = inlined_call_operand.hbm [shape: bf16[128,128], index: 7, kind: input, shape index: {}]   ;;  %s1900_s8 = inlined_call_operand.vmem [shape: f32[1,128], index: 8, kind: input, shape index: {}]   ;;  %s1901_s9 = inlined_call_operand.hbm [shape: f32[2,128], index: 9, kind: output, shape index: {}]  }
   0x1   :  { %15 = vsyncpa [#allocation6], 0 }
   0x2   :  { %16 = vsyncpa [#allocation9], 0 }
   0x3   :  { %17 = vsyncpa [#allocation4], 0  ;;  %s1699_s30 = smov [#allocation5]   ;;  %s1559_s13 = scalar_lea.hbm %s1893_s1, 8192 }
   0x4   :  { %s33_s10 = sshll.u32 %s1699_s30, 4  ;;  %p1560_p0 = scmp.ne.s32.totalorder %s1893_s1, %s1559_s13  ;;  %s34_s10 = int_to_ptr.vmem [resolvable:$true] %s33_s10 }
   0x5   :  { %p1563_p1 = scmp.lt.u32.totalorder %s1559_s13, %s1893_s1 }
   0x7   :  { %p1565_p2 = pnand %p1563_p1, %p1560_p0 }
   0x9   :  { %1568 = shalt.err (!%p1565_p2)
}
   0xa   :  { %s1569_s18 = scalar_lea.vmem %s34_s10, 8192  ;;  %p1574_p4 = scmp.lt.s32.totalorder %s34_s10, %s34_s10 }
   0xb   :  { %p1570_p3 = scmp.ne.s32.totalorder %s34_s10, %s1569_s18  ;;  %p1575_p5 = scmp.lt.s32.totalorder %s1569_s18, %s1569_s18 }
   0xd   :  { %p1576_p6 = por %p1575_p5, %p1574_p4 }
   0xf   :  { %p1577_p7 = pnand %p1576_p6, %p1570_p3 }
  0x11   :  { %1580 = shalt.err (!%p1577_p7)
}
  0x12   :  { %s1700_s19 = smov 64   ;;  %s1701_s20 = smov 4  }
  0x13   :  { %39 = dma.hbm_to_vmem [thread:$0]  %s1893_s1, 8192, %s34_s10, [#allocation6], %s1700_s19, %s1700_s19, %s1701_s20  }
  0x14   :  { %s1702_s23 = smov [#allocation8]   ;;  %s1703_s25 = smov [#allocation2]  }
  0x15   :  { %s61_s24 = sshll.u32 %s1702_s23, 4  ;;  %s24_s26 = sshll.u32 %s1703_s25, 4  ;;  %s62_s24 = int_to_ptr.vmem [resolvable:$true] %s61_s24  ;;  %s25_s26 = int_to_ptr.vmem [resolvable:$true] %s24_s26 }
  0x16   :  { %s1581_s29 = scalar_lea.hbm %s1897_s5, 1024 }
  0x17   :  { %p1582_p8 = scmp.ne.s32.totalorder %s1897_s5, %s1581_s29  ;;  %p1585_p9 = scmp.lt.u32.totalorder %s1581_s29, %s1897_s5 }
  0x19   :  { %p1587_p10 = pnand %p1585_p9, %p1582_p8 }
  0x1b   :  { %1590 = shalt.err (!%p1587_p10)
}
  0x1c   :  { %s1591_s1 = scalar_lea.vmem %s62_s24, 1024  ;;  %p1596_p12 = scmp.lt.s32.totalorder %s62_s24, %s62_s24 }
  0x1d   :  { %p1592_p11 = scmp.ne.s32.totalorder %s62_s24, %s1591_s1  ;;  %p1597_p13 = scmp.lt.s32.totalorder %s1591_s1, %s1591_s1 }
  0x1f   :  { %p1598_p0 = por %p1597_p13, %p1596_p12 }
  0x21   :  { %p1599_p1 = pnand %p1598_p0, %p1592_p11 }
  0x23   :  { %1602 = shalt.err (!%p1599_p1)
}
  0x24   :  { %67 = dma.hbm_to_vmem [thread:$0]  %s1897_s5, 1024, %s62_s24, [#allocation9], %s1700_s19, %s1700_s19, %s1701_s20  }
  0x25   :  { %s1603_s17 = scalar_lea.hbm %s1892_s0, 256 }
  0x26   :  { %p1604_p2 = scmp.ne.s32.totalorder %s1892_s0, %s1603_s17  ;;  %p1607_p3 = scmp.lt.u32.totalorder %s1603_s17, %s1892_s0 }
  0x28   :  { %p1609_p4 = pnand %p1607_p3, %p1604_p2 }
  0x2a   :  { %1612 = shalt.err (!%p1609_p4)
}
  0x2b   :  { %s1613_s25 = scalar_lea.vmem %s25_s26, 256  ;;  %p1618_p6 = scmp.lt.s32.totalorder %s25_s26, %s25_s26 }
  0x2c   :  { %p1614_p5 = scmp.ne.s32.totalorder %s25_s26, %s1613_s25  ;;  %p1619_p7 = scmp.lt.s32.totalorder %s1613_s25, %s1613_s25 }
  0x2e   :  { %p1620_p8 = por %p1619_p7, %p1618_p6 }
  0x30   :  { %p1621_p9 = pnand %p1620_p8, %p1614_p5 }
  0x32   :  { %1624 = shalt.err (!%p1621_p9)
}
  0x33   :  { %27 = dma.hbm_to_vmem [thread:$0]  %s1892_s0, 256, %s25_s26, [#allocation3]  }
  0x34   :  { %s1704_s27 = smov [#allocation7]   ;;  %s1705_s29 = smov [#allocation10]  }
  0x35   :  { %s47_s28 = sshll.u32 %s1704_s27, 4  ;;  %s75_s30 = sshll.u32 %s1705_s29, 4  ;;  %s48_s28 = int_to_ptr.vmem [resolvable:$true] %s47_s28  ;;  %s76_s30 = int_to_ptr.vmem [resolvable:$true] %s75_s30 }
  0x36   :  { %s1625_s13 = scalar_lea.hbm %s1895_s3, 1024 }
  0x37   :  { %p1626_p10 = scmp.ne.s32.totalorder %s1895_s3, %s1625_s13  ;;  %p1629_p11 = scmp.lt.u32.totalorder %s1625_s13, %s1895_s3 }
  0x39   :  { %p1631_p12 = pnand %p1629_p11, %p1626_p10 }
  0x3b   :  { %1634 = shalt.err (!%p1631_p12)
}
  0x3c   :  { %s1635_s0 = scalar_lea.vmem %s48_s28, 1024  ;;  %p1640_p0 = scmp.lt.s32.totalorder %s48_s28, %s48_s28 }
  0x3d   :  { %p1636_p13 = scmp.ne.s32.totalorder %s48_s28, %s1635_s0  ;;  %p1641_p1 = scmp.lt.s32.totalorder %s1635_s0, %s1635_s0 }
  0x3f   :  { %p1642_p2 = por %p1641_p1, %p1640_p0 }
  0x41   :  { %p1643_p3 = pnand %p1642_p2, %p1636_p13 }
  0x43   :  { %1646 = shalt.err (!%p1643_p3)
}
  0x44   :  { %53 = dma.hbm_to_vmem [thread:$0]  %s1895_s3, 1024, %s48_s28, [#allocation6], %s1700_s19, %s1700_s19, %s1701_s20  }
  0x45   :  { %s1647_s21 = scalar_lea.hbm %s1899_s7, 1024 }
  0x46   :  { %p1648_p4 = scmp.ne.s32.totalorder %s1899_s7, %s1647_s21  ;;  %p1651_p5 = scmp.lt.u32.totalorder %s1647_s21, %s1899_s7 }
  0x48   :  { %p1653_p6 = pnand %p1651_p5, %p1648_p4 }
  0x4a   :  { %1656 = shalt.err (!%p1653_p6)
}
  0x4b   :  { %s1657_s24 = scalar_lea.vmem %s76_s30, 1024  ;;  %p1662_p8 = scmp.lt.s32.totalorder %s76_s30, %s76_s30 }
  0x4c   :  { %p1658_p7 = scmp.ne.s32.totalorder %s76_s30, %s1657_s24  ;;  %p1663_p9 = scmp.lt.s32.totalorder %s1657_s24, %s1657_s24 }
  0x4e   :  { %p1664_p10 = por %p1663_p9, %p1662_p8 }
  0x50   :  { %p1665_p11 = pnand %p1664_p10, %p1658_p7 }
  0x52   :  { %1668 = shalt.err (!%p1665_p11)
}
  0x53   :  { %81 = dma.hbm_to_vmem [thread:$0]  %s1899_s7, 1024, %s76_s30, [#allocation9], %s1700_s19, %s1700_s19, %s1701_s20  }
  0x54   :  { %1691 = dma.done.wait [#allocation3], 256  }
  0x55   :  { %1692 = vsyncadd [#allocation3], 4294967040 }
  0x56   :  { %1693 = dma.done.wait [#allocation6], 9216  }
  0x57   :  { %1694 = vsyncadd [#allocation6], 4294958080 }
  0x58   :  { %1695 = dma.done.wait [#allocation9], 2048  }
  0x59   :  { %1696 = vsyncadd [#allocation9], 4294965248  ;;  %v1469_v0 = vld [vmem:[#allocation5 + $0x40] sm:$0xff]   ;;  %v1473_v4 = vld [vmem:[#allocation5 + $0x48] sm:$0xff]   ;;  %v1706_v22 = vmov 1983009808   ;;  %v108_v24 = vlaneseq }
  0x5a   :  { %v1470_v1 = vld [vmem:[#allocation5 + $0xc0] sm:$0xff]   ;;  %1283 = vmatprep.subr.bf16.mxu0 %v1469_v0  ;;  %v1474_v5 = vld [vmem:[#allocation5 + $0xc8] sm:$0xff]   ;;  %v1477_v8 = vld [vmem:[#allocation5 + $0x50] sm:$0xff]   ;;  %v106_v23 = vunpack.c.l.s4 %v1706_v22  ;;  %vm1708_vm0 = vmmov 0   ;;  %s1709_s11 = smov [#allocation11]  }
  0x5b   :  { %v1471_v2 = vld [vmem:[#allocation5] sm:$0xff]   ;;  %1305 = vmatprep.subr.bf16.mxu1 %v1470_v1  ;;  %v1475_v6 = vld [vmem:[#allocation5 + $0x8] sm:$0xff]   ;;  %v1478_v9 = vld [vmem:[#allocation5 + $0xd0] sm:$0xff]   ;;  %v109_v30 = vshrl.u32 %v108_v24, 7  ;;  %s1180_s12 = sshll.u32 %s1709_s11, 4  ;;  %s1181_s12 = int_to_ptr.vmem [resolvable:$true] %s1180_s12 }
  0x5c   :  { %v1472_v3 = vld [vmem:[#allocation5 + $0x80] sm:$0xff]   ;;  %1284 = vmatpush3.bf16.msra.mxu0 %v1471_v2  ;;  %v1476_v7 = vld [vmem:[#allocation5 + $0x88] sm:$0xff]   ;;  %v1479_v10 = vld [vmem:[#allocation5 + $0x10] sm:$0xff]   ;;  %v107_v29 = vunpack.c.0.s8 %v106_v23  ;;  %p1674_p13 = scmp.lt.s32.totalorder %s1181_s12, %s1181_s12 }
  0x5d   :  { %1306 = vmatpush3.bf16.msra.mxu1 %v1472_v3  ;;  %1285 = vmatprep.subr.bf16.mxu0 %v1473_v4  ;;  %v1480_v11 = vld [vmem:[#allocation5 + $0x90] sm:$0xff]   ;;  %v1481_v12 = vld [vmem:[#allocation5 + $0x58] sm:$0xff]   ;;  %v1485_v16 = vld [vmem:[#allocation5 + $0x60] sm:$0xff]  }
  0x5e   :  { %1307 = vmatprep.subr.bf16.mxu1 %v1474_v5  ;;  %v1482_v13 = vld [vmem:[#allocation5 + $0xd8] sm:$0xff]   ;;  %v1486_v17 = vld [vmem:[#allocation5 + $0xe0] sm:$0xff]   ;;  %v1489_v20 = vld [vmem:[#allocation5 + $0x68] sm:$0xff]   ;;  %v1832_v35 = vsub.s32 %v107_v29, %v109_v30 }
  0x5f   :  { %v1483_v14 = vld [vmem:[#allocation5 + $0x18] sm:$0xff]   ;;  %v1487_v18 = vld [vmem:[#allocation5 + $0x20] sm:$0xff]   ;;  %v1490_v21 = vld [vmem:[#allocation5 + $0xe8] sm:$0xff]  }
  0x60   :  { %1286 = vmatpush3.bf16.msra.mxu0 %v1475_v6  ;;  %v1484_v15 = vld [vmem:[#allocation5 + $0x98] sm:$0xff]   ;;  %v1488_v19 = vld [vmem:[#allocation5 + $0xa0] sm:$0xff]   ;;  %v1491_v25 = vld [vmem:[#allocation5 + $0x28] sm:$0xff]  }
  0x61   :  { %1308 = vmatpush3.bf16.msra.mxu1 %v1476_v7  ;;  %1287 = vmatprep.subr.bf16.mxu0 %v1477_v8  ;;  %v1492_v26 = vld [vmem:[#allocation5 + $0xa8] sm:$0xff]   ;;  %v1493_v27 = vld [vmem:[#allocation5 + $0x70] sm:$0xff]   ;;  %v1497_v33 = vld [vmem:[#allocation5 + $0x78] sm:$0xff]  }
  0x62   :  { %1309 = vmatprep.subr.bf16.mxu1 %v1478_v9  ;;  %v1494_v28 = vld [vmem:[#allocation5 + $0xf0] sm:$0xff]   ;;  %v1498_v34 = vld [vmem:[#allocation5 + $0xf8] sm:$0xff]   ;;  %v1502_v41 = vld [vmem:[#allocation5 + $0x140] sm:$0xff]  }
  0x63   :  { %v1495_v31 = vld [vmem:[#allocation5 + $0x30] sm:$0xff]   ;;  %v1499_v36 = vld [vmem:[#allocation5 + $0x38] sm:$0xff]   ;;  %v1503_v42 = vld [vmem:[#allocation5 + $0x1c0] sm:$0xff]  }
  0x64   :  { %1288 = vmatpush3.bf16.msra.mxu0 %v1479_v10  ;;  %v1496_v32 = vld [vmem:[#allocation5 + $0xb0] sm:$0xff]   ;;  %v1500_v37 = vld [vmem:[#allocation5 + $0xb8] sm:$0xff]   ;;  %v1504_v46 = vld [vmem:[#allocation5 + $0x100] sm:$0xff]  }
  0x65   :  { %1310 = vmatpush3.bf16.msra.mxu1 %v1480_v11  ;;  %1289 = vmatprep.subr.bf16.mxu0 %v1481_v12  ;;  %v100_v38 = vld [vmem:[#allocation2] sm:$0xff]  ;;  %v1505_v49 = vld [vmem:[#allocation5 + $0x180] sm:$0xff]   ;;  %v1506_v51 = vld [vmem:[#allocation5 + $0x148] sm:$0xff]  }
  0x66   :  { %1311 = vmatprep.subr.bf16.mxu1 %v1482_v13  ;;  %v111_v39 = vrot.slane %v100_v38, %v1832_v35  ;;  %v104_v40 = vcombine.high %v100_v38, %v100_v38  ;;  %v1507_v53 = vld [vmem:[#allocation5 + $0x1c8] sm:$0xff]   ;;  %v1510_v56 = vld [vmem:[#allocation5 + $0x150] sm:$0xff]   ;;  %v1514_v60 = vld [vmem:[#allocation5 + $0x158] sm:$0xff]  }
  0x67   :  { %v1508_v54 = vld [vmem:[#allocation5 + $0x108] sm:$0xff]   ;;  %v1511_v57 = vld [vmem:[#allocation5 + $0x1d0] sm:$0xff]   ;;  %v1515_v61 = vld [vmem:[#allocation5 + $0x1d8] sm:$0xff]  }
  0x68   :  { %1290 = vmatpush3.bf16.msra.mxu0 %v1483_v14  ;;  %v119_v43 = vcombine.high %v111_v39, %v111_v39  ;;  %v118_v44 = vrot.slane %v104_v40, %v1832_v35  ;;  %v146_v45 = vpack.c.bf16 %v111_v39, %v111_v39  ;;  %v1509_v55 = vld [vmem:[#allocation5 + $0x188] sm:$0xff]   ;;  %v1512_v58 = vld [vmem:[#allocation5 + $0x110] sm:$0xff]   ;;  %v1516_v62 = vld [vmem:[#allocation5 + $0x118] sm:$0xff]  }
  0x69   :  { %1312 = vmatpush3.bf16.msra.mxu1 %v1484_v15  ;;  %1291 = vmatprep.subr.bf16.mxu0 %v1485_v16  ;;  %v1513_v59 = vld [vmem:[#allocation5 + $0x190] sm:$0xff]   ;;  %v1517_v63 = vld [vmem:[#allocation5 + $0x198] sm:$0xff]   ;;  %v1518_v0 = vld [vmem:[#allocation5 + $0x160] sm:$0xff]  }
  0x6a   :  { %1313 = vmatprep.subr.bf16.mxu1 %v1486_v17  ;;  %v147_v47 = vpack.c.bf16 %v119_v43, %v119_v43  ;;  %v120_v48 = vcombine.high %v118_v44, %v118_v44  ;;  %v148_v50 = vpack.c.bf16 %v118_v44, %v118_v44  ;;  %v1519_v1 = vld [vmem:[#allocation5 + $0x1e0] sm:$0xff]   ;;  %v1522_v4 = vld [vmem:[#allocation5 + $0x168] sm:$0xff]   ;;  %v1526_v8 = vld [vmem:[#allocation5 + $0x170] sm:$0xff]  }
  0x6b   :  { %v1520_v2 = vld [vmem:[#allocation5 + $0x120] sm:$0xff]   ;;  %v1523_v5 = vld [vmem:[#allocation5 + $0x1e8] sm:$0xff]   ;;  %v1527_v9 = vld [vmem:[#allocation5 + $0x1f0] sm:$0xff]  }
  0x6c   :  { %1292 = vmatpush3.bf16.msra.mxu0 %v1487_v18  ;;  %705 = vmatprep.mubr.bf16.mxu0 %v147_v47  ;;  %v149_v52 = vpack.c.bf16 %v120_v48, %v120_v48  ;;  %v1521_v3 = vld [vmem:[#allocation5 + $0x1a0] sm:$0xff]   ;;  %v1524_v6 = vld [vmem:[#allocation5 + $0x128] sm:$0xff]   ;;  %v1528_v10 = vld [vmem:[#allocation5 + $0x130] sm:$0xff]  }
  0x6d   :  { %1314 = vmatpush3.bf16.msra.mxu1 %v1488_v19  ;;  %1293 = vmatprep.subr.bf16.mxu0 %v1489_v20  ;;  %v1525_v7 = vld [vmem:[#allocation5 + $0x1a8] sm:$0xff]   ;;  %v1529_v11 = vld [vmem:[#allocation5 + $0x1b0] sm:$0xff]   ;;  %v1530_v12 = vld [vmem:[#allocation5 + $0x178] sm:$0xff]  }
  0x6e   :  { %1315 = vmatprep.subr.bf16.mxu1 %v1490_v21  ;;  %745 = vmatprep.mubr.bf16.mxu1 %v149_v52  ;;  %v1531_v13 = vld [vmem:[#allocation5 + $0x1f8] sm:$0xff]   ;;  %v1537_v29 = vld [vmem:[#allocation7 + $0x10] sm:$0xff]   ;;  %v1547_v39 = vld [vmem:[#allocation8 + $0x20] sm:$0xff]  }
  0x6f   :  { %v1532_v14 = vld [vmem:[#allocation5 + $0x138] sm:$0xff]   ;;  %v1548_v40 = vld [vmem:[#allocation8 + $0x28] sm:$0xff]  }
  0x70   :  { %1294 = vmatpush3.bf16.msra.mxu0 %v1491_v25  ;;  %v101_v15 = vld [vmem:[#allocation2 + $0x8] sm:$0xff] }
  0x71   :  { %1316 = vmatpush3.bf16.msra.mxu1 %v1492_v26  ;;  %1295 = vmatprep.subr.bf16.mxu0 %v1493_v27  ;;  %v1533_v16 = vld [vmem:[#allocation5 + $0x1b8] sm:$0xff]   ;;  %v128_v17 = vrot.slane %v101_v15, %v1832_v35  ;;  %v121_v18 = vcombine.high %v101_v15, %v101_v15  ;;  %v1535_v26 = vld [vmem:[#allocation7] sm:$0xff]   ;;  %v1707_v27 = vmov 0.0  }
  0x72   :  { %1317 = vmatprep.subr.bf16.mxu1 %v1494_v28  ;;  %v1536_v28 = vld [vmem:[#allocation7 + $0x8] sm:$0xff]   ;;  %v1538_v30 = vld [vmem:[#allocation7 + $0x18] sm:$0xff]  }
  0x73   :  { %v136_v19 = vcombine.high %v128_v17, %v128_v17  ;;  %v135_v20 = vrot.slane %v121_v18, %v1832_v35  ;;  %v150_v21 = vpack.c.bf16 %v128_v17, %v128_v17  ;;  %v1543_v35 = vld [vmem:[#allocation8] sm:$0xff]   ;;  %v1546_v38 = vld [vmem:[#allocation8 + $0x18] sm:$0xff]  }
  0x74   :  { %1296 = vmatpush3.bf16.msra.mxu0 %v1495_v31  ;;  %v1539_v31 = vld [vmem:[#allocation7 + $0x20] sm:$0xff]  }
  0x75   :  { %1318 = vmatpush3.bf16.msra.mxu1 %v1496_v32  ;;  %1297 = vmatprep.subr.bf16.mxu0 %v1497_v33  ;;  %v151_v22 = vpack.c.bf16 %v136_v19, %v136_v19  ;;  %v137_v23 = vcombine.high %v135_v20, %v135_v20  ;;  %v152_v24 = vpack.c.bf16 %v135_v20, %v135_v20  ;;  %v1540_v32 = vld [vmem:[#allocation7 + $0x28] sm:$0xff]   ;;  %v1541_v33 = vld [vmem:[#allocation7 + $0x30] sm:$0xff]  }
  0x76   :  { %1319 = vmatprep.subr.bf16.mxu1 %v1498_v34  ;;  %v1542_v34 = vld [vmem:[#allocation7 + $0x38] sm:$0xff]   ;;  %v1557_v20 = vld [vmem:[#allocation10 + $0x30] sm:$0xff]  }
  0x77   :  { %v153_v25 = vpack.c.bf16 %v137_v23, %v137_v23 }
  0x78   :  { %1298 = vmatpush3.bf16.msra.mxu0 %v1499_v36  ;;  %v1544_v36 = vld [vmem:[#allocation8 + $0x8] sm:$0xff]  }
  0x79   :  { %1320 = vmatpush3.bf16.msra.mxu1 %v1500_v37  ;;  %1327 = vmatprep.subr.bf16.mxu0 %v1502_v41  ;;  %v1545_v37 = vld [vmem:[#allocation8 + $0x10] sm:$0xff]  }
  0x7a   :  { %1349 = vmatprep.subr.bf16.mxu1 %v1503_v42  ;;  %v1191_v42 = vld [vmem:[%s1894_s2] ss:$0 sm:$0xff] }
  0x7b   :  { %706 = vmatmul.mubr.bf16.vlgmr.msra.gmra.mrb[0].mxu0 %v146_v45 }
  0x7c   :  { %1328 = vmatpush3.bf16.msra.mxu0 %v1504_v46  ;;  %746 = vmatmul.mubr.bf16.vlgmr.msra.gmra.mrb[0].mxu1 %v148_v50 }
  0x7d   :  { %1329 = vmatprep.subr.bf16.mxu0 %v1506_v51  ;;  %1350 = vmatpush3.bf16.msra.mxu1 %v1505_v49 }
  0x7e   :  { %1351 = vmatprep.subr.bf16.mxu1 %v1507_v53  ;;  %785 = vmatprep.mubr.bf16.mxu0 %v151_v22  ;;  %v1265_v22 = vld [vmem:[%s1898_s6] ss:$0 sm:$0xff]  ;;  %s1669_s6 = scalar_lea.vmem %s1181_s12, 32 }
  0x7f   :  { %825 = vmatprep.mubr.bf16.mxu1 %v153_v25  ;;  %p1670_p12 = scmp.ne.s32.totalorder %s1181_s12, %s1669_s6  ;;  %p1675_p0 = scmp.lt.s32.totalorder %s1669_s6, %s1669_s6 }
  0x80   :  { %1330 = vmatpush3.bf16.msra.mxu0 %v1508_v54 }
  0x81   :  { %1331 = vmatprep.subr.bf16.mxu0 %v1510_v56  ;;  %1352 = vmatpush3.bf16.msra.mxu1 %v1509_v55  ;;  %p1676_p1 = por %p1675_p0, %p1674_p13 }
  0x82   :  { %1353 = vmatprep.subr.bf16.mxu1 %v1511_v57 }
  0x83   :  { %p1677_p2 = pnand %p1676_p1, %p1670_p12 }
  0x84   :  { %1332 = vmatpush3.bf16.msra.mxu0 %v1512_v58 }
  0x85   :  { %1333 = vmatprep.subr.bf16.mxu0 %v1514_v60  ;;  %1354 = vmatpush3.bf16.msra.mxu1 %v1513_v59 }
  0x86   :  { %1355 = vmatprep.subr.bf16.mxu1 %v1515_v61 }
  0x88   :  { %1334 = vmatpush3.bf16.msra.mxu0 %v1516_v62 }
  0x89   :  { %1335 = vmatprep.subr.bf16.mxu0 %v1518_v0  ;;  %1356 = vmatpush3.bf16.msra.mxu1 %v1517_v63 }
  0x8a   :  { %1357 = vmatprep.subr.bf16.mxu1 %v1519_v1 }
  0x8c   :  { %1336 = vmatpush3.bf16.msra.mxu0 %v1520_v2 }
  0x8d   :  { %1337 = vmatprep.subr.bf16.mxu0 %v1522_v4  ;;  %1358 = vmatpush3.bf16.msra.mxu1 %v1521_v3  ;;  %v1549_v4 = vld [vmem:[#allocation8 + $0x30] sm:$0xff]  }
  0x8e   :  { %1359 = vmatprep.subr.bf16.mxu1 %v1523_v5  ;;  %v1550_v5 = vld [vmem:[#allocation8 + $0x38] sm:$0xff]  }
  0x90   :  { %1338 = vmatpush3.bf16.msra.mxu0 %v1524_v6  ;;  %v1551_v6 = vld [vmem:[#allocation10] sm:$0xff]  }
  0x91   :  { %1339 = vmatprep.subr.bf16.mxu0 %v1526_v8  ;;  %1360 = vmatpush3.bf16.msra.mxu1 %v1525_v7  ;;  %v1552_v7 = vld [vmem:[#allocation10 + $0x8] sm:$0xff]   ;;  %v1553_v8 = vld [vmem:[#allocation10 + $0x10] sm:$0xff]  }
  0x92   :  { %1361 = vmatprep.subr.bf16.mxu1 %v1527_v9  ;;  %v1554_v9 = vld [vmem:[#allocation10 + $0x18] sm:$0xff]  }
  0x94   :  { %1340 = vmatpush3.bf16.msra.mxu0 %v1528_v10  ;;  %v1555_v10 = vld [vmem:[#allocation10 + $0x20] sm:$0xff]  }
  0x95   :  { %1341 = vmatprep.subr.bf16.mxu0 %v1530_v12  ;;  %1362 = vmatpush3.bf16.msra.mxu1 %v1529_v11  ;;  %v1556_v11 = vld [vmem:[#allocation10 + $0x28] sm:$0xff]   ;;  %v1256_v12 = vld [vmem:[%s1896_s4] ss:$0 sm:$0xff] }
  0x96   :  { %1363 = vmatprep.subr.bf16.mxu1 %v1531_v13 }
  0x98   :  { %1342 = vmatpush3.bf16.msra.mxu0 %v1532_v14 }
  0x99   :  { %1364 = vmatpush3.bf16.msra.mxu1 %v1533_v16  ;;  %1398 = vmatprep.subr.bf16.mxu0 %v1707_v27 }
  0x9a   :  { %1418 = vmatprep.subr.bf16.mxu1 %v1707_v27 }
  0x9b   :  { %786 = vmatmul.mubr.bf16.vlgmr.msra.gmra.mrb[4].mxu0 %v150_v21  ;;  %v1558_v21 = vld [vmem:[#allocation10 + $0x38] sm:$0xff]  }
  0x9c   :  { %826 = vmatmul.mubr.bf16.vlgmr.msra.gmra.mrb[4].mxu1 %v152_v24  ;;  %1399 = vmatpush3.bf16.msra.mxu0 %v1535_v26 }
  0x9d   :  { %1400 = vmatprep.subr.bf16.mxu0 %v1707_v27  ;;  %1414 = vmatprep.mubr.msk.bf16.mxu0 %vm1708_vm0, %v1707_v27 }
  0x9e   :  { %1434 = vmatprep.mubr.msk.bf16.mxu1 %vm1708_vm0, %v1707_v27  ;;  %1419 = vmatpush3.bf16.msra.mxu1 %v1543_v35 }
  0x9f   :  { %1420 = vmatprep.subr.bf16.mxu1 %v1707_v27 }
  0xa0   :  { %1401 = vmatpush3.bf16.msra.mxu0 %v1536_v28 }
  0xa1   :  { %1402 = vmatprep.subr.bf16.mxu0 %v1707_v27 }
  0xa2   :  { %1421 = vmatpush3.bf16.msra.mxu1 %v1544_v36 }
  0xa3   :  { %1422 = vmatprep.subr.bf16.mxu1 %v1707_v27 }
  0xa4   :  { %1403 = vmatpush3.bf16.msra.mxu0 %v1537_v29 }
  0xa5   :  { %1404 = vmatprep.subr.bf16.mxu0 %v1707_v27 }
  0xa6   :  { %1423 = vmatpush3.bf16.msra.mxu1 %v1545_v37 }
  0xa7   :  { %1424 = vmatprep.subr.bf16.mxu1 %v1707_v27 }
  0xa8   :  { %1405 = vmatpush3.bf16.msra.mxu0 %v1538_v30 }
  0xa9   :  { %1406 = vmatprep.subr.bf16.mxu0 %v1707_v27 }
  0xaa   :  { %1425 = vmatpush3.bf16.msra.mxu1 %v1546_v38 }
  0xab   :  { %1426 = vmatprep.subr.bf16.mxu1 %v1707_v27 }
  0xac   :  { %1407 = vmatpush3.bf16.msra.mxu0 %v1539_v31  ;;  %v1274_v31 = vld [vmem:[%s1900_s8] ss:$0 sm:$0xff] }
  0xad   :  { %1408 = vmatprep.subr.bf16.mxu0 %v1707_v27 }
  0xae   :  { %1427 = vmatpush3.bf16.msra.mxu1 %v1547_v39 }
  0xaf   :  { %1428 = vmatprep.subr.bf16.mxu1 %v1707_v27 }
  0xb0   :  { %1409 = vmatpush3.bf16.msra.mxu0 %v1540_v32 }
  0xb1   :  { %1410 = vmatprep.subr.bf16.mxu0 %v1707_v27 }
  0xb2   :  { %1429 = vmatpush3.bf16.msra.mxu1 %v1548_v40 }
  0xb3   :  { %1430 = vmatprep.subr.bf16.mxu1 %v1707_v27 }
  0xb4   :  { %1411 = vmatpush3.bf16.msra.mxu0 %v1541_v33 }
  0xb5   :  { %1412 = vmatprep.subr.bf16.mxu0 %v1707_v27 }
  0xb6   :  { %1431 = vmatpush3.bf16.msra.mxu1 %v1549_v4 }
  0xb7   :  { %1432 = vmatprep.subr.bf16.mxu1 %v1707_v27 }
  0xb8   :  { %1413 = vmatpush3.bf16.msra.mxu0 %v1542_v34 }
  0xb9   :  { %1438 = vmatprep.subr.bf16.mxu0 %v1707_v27 }
  0xba   :  { %1433 = vmatpush3.bf16.msra.mxu1 %v1550_v5 }
 0x14e   :  { %v1299_v41 = vpop.f32.mrb[0].mxu0 }
 0x14f   :  { %v1300_v43 = vpop.f32.mrb[1].mxu0  ;;  %v1321_v44 = vpop.f32.mrb[0].mxu1 }
 0x150   :  { %v1301_v45 = vadd.f32 %v1300_v43, %v1299_v41  ;;  %v1302_v46 = vpop.f32.mrb[2].mxu0  ;;  %v1322_v47 = vpop.f32.mrb[1].mxu1 }
 0x151   :  { %v1303_v48 = vpop.f32.mrb[3].mxu0  ;;  %v1323_v50 = vadd.f32 %v1322_v47, %v1321_v44  ;;  %v1324_v51 = vpop.f32.mrb[2].mxu1 }
 0x152   :  { %v708_v49 = vadd.f32 %v1301_v45, %v1191_v42  ;;  %v1325_v52 = vpop.f32.mrb[3].mxu1 }
 0x154   :  { %v748_v53 = vadd.f32 %v1323_v50, %v708_v49 }
 0x16e   :  { %v1343_v54 = vpop.f32.mrb[4].mxu0 }
 0x16f   :  { %v1344_v55 = vpop.f32.mrb[5].mxu0  ;;  %v1365_v56 = vpop.f32.mrb[4].mxu1 }
 0x170   :  { %v1345_v57 = vadd.f32 %v1344_v55, %v1343_v54  ;;  %v1346_v58 = vpop.f32.mrb[6].mxu0  ;;  %v1366_v59 = vpop.f32.mrb[5].mxu1 }
 0x171   :  { %v1347_v60 = vpop.f32.mrb[7].mxu0  ;;  %v1367_v62 = vadd.f32 %v1366_v59, %v1365_v56  ;;  %v1368_v63 = vpop.f32.mrb[6].mxu1 }
 0x172   :  { %v788_v61 = vadd.f32 %v1345_v57, %v748_v53  ;;  %v1369_v0 = vpop.f32.mrb[7].mxu1 }
 0x174   :  { %v828_v1 = vadd.f32 %v1367_v62, %v788_v61 }
 0x176   :  { %v833_v2 = vmax.f32 %v828_v1, 0.0 }
 0x178   :  { %v834_v3 = vpack.c.bf16 %v833_v2, %v833_v2 }
 0x17a   :  { %1415 = vmatmul.mubr.bf16.vlgmr.msra.gmra.mrb[8].mxu0 %v834_v3 }
 0x17b   :  { %1454 = vmatprep.mubr.msk.bf16.mxu0 %vm1708_vm0, %v1707_v27  ;;  %1439 = vmatpush3.bf16.msra.mxu0 %v1551_v6 }
 0x17c   :  { %1440 = vmatprep.subr.bf16.mxu0 %v1707_v27 }
 0x17f   :  { %1441 = vmatpush3.bf16.msra.mxu0 %v1552_v7 }
 0x180   :  { %1442 = vmatprep.subr.bf16.mxu0 %v1707_v27 }
 0x183   :  { %1443 = vmatpush3.bf16.msra.mxu0 %v1553_v8 }
 0x184   :  { %1444 = vmatprep.subr.bf16.mxu0 %v1707_v27 }
 0x187   :  { %1445 = vmatpush3.bf16.msra.mxu0 %v1554_v9 }
 0x188   :  { %1446 = vmatprep.subr.bf16.mxu0 %v1707_v27 }
 0x18b   :  { %1447 = vmatpush3.bf16.msra.mxu0 %v1555_v10 }
 0x18c   :  { %1448 = vmatprep.subr.bf16.mxu0 %v1707_v27 }
 0x18f   :  { %1449 = vmatpush3.bf16.msra.mxu0 %v1556_v11 }
 0x190   :  { %1450 = vmatprep.subr.bf16.mxu0 %v1707_v27 }
 0x193   :  { %1451 = vmatpush3.bf16.msra.mxu0 %v1557_v20 }
 0x194   :  { %1452 = vmatprep.subr.bf16.mxu0 %v1707_v27 }
 0x197   :  { %1453 = vmatpush3.bf16.msra.mxu0 %v1558_v21 }
 0x24d   :  { %v940_v13 = vpop.f32.mrb[8].mxu0 }
 0x24e   :  { %v941_v14 = vadd.f32 %v1256_v12, %v940_v13  ;;  %v1416_v15 = vpop.f32.mrb[9].mxu0 }
 0x24f   :  { %v943_v16 = vpop.f32.mrb[10].mxu0 }
 0x250   :  { %v946_v17 = vmax.f32 %v941_v14, 0.0  ;;  %v1417_v18 = vpop.f32.mrb[11].mxu0 }
 0x252   :  { %v947_v19 = vpack.c.bf16 %v946_v17, %v946_v17 }
 0x254   :  { %1435 = vmatmul.mubr.bf16.vlgmr.msra.gmra.mrb[8].mxu1 %v947_v19 }
 0x327   :  { %v1053_v23 = vpop.f32.mrb[8].mxu1 }
 0x328   :  { %v1054_v24 = vadd.f32 %v1265_v22, %v1053_v23  ;;  %v1436_v25 = vpop.f32.mrb[9].mxu1 }
 0x329   :  { %v1056_v26 = vpop.f32.mrb[10].mxu1 }
 0x32a   :  { %v1059_v28 = vmax.f32 %v1054_v24, 0.0  ;;  %v1437_v29 = vpop.f32.mrb[11].mxu1 }
 0x32c   :  { %v1060_v30 = vpack.c.bf16 %v1059_v28, %v1059_v28 }
 0x32e   :  { %1455 = vmatmul.mubr.bf16.vlgmr.msra.gmra.mrb[12].mxu0 %v1060_v30 }
 0x401   :  { %v1166_v32 = vpop.f32.mrb[12].mxu0 }
 0x402   :  { %v1167_v27 = vadd.f32 %v1274_v31, %v1166_v32  ;;  %v1456_v33 = vpop.f32.mrb[13].mxu0 }
 0x403   :  { %v1169_v34 = vpop.f32.mrb[14].mxu0 }
 0x404   :  { %v1172_v35 = vmax.f32 %v1167_v27, 0.0  ;;  %v1457_v36 = vpop.f32.mrb[15].mxu0 }
 0x406   :  { %1173 = vst [vmem:[#allocation11] sm:$0x3] %v1172_v35 }
 0x407   :  { %1680 = shalt.err (!%p1677_p2)
}
 0x408   :  { %s1681_s8 = scalar_lea.hbm %s1901_s9, 32 }
 0x409   :  { %p1682_p3 = scmp.ne.s32.totalorder %s1901_s9, %s1681_s8  ;;  %p1685_p4 = scmp.lt.u32.totalorder %s1681_s8, %s1901_s9 }
 0x40b   :  { %p1687_p5 = pnand %p1685_p4, %p1682_p3 }
 0x40d   :  { %1690 = shalt.err (!%p1687_p5)
}
 0x40e   :  { %1183 = dma.vmem_to_hbm [thread:$0]  %s1181_s12, 32, %s1901_s9, [#allocation4]  }
 0x40f   :  { %1697 = dma.done.wait [#allocation4], 32  }
 0x410   :  { %1698 = vsyncadd [#allocation4], 4294967264 }
 0x411   :  { %1187 = vsyncpa [#allocation3], 1 }
 0x412   :  { %1188 = vsyncpa [#allocation6], 1 }
 0x413   :  { %1189 = vsyncpa [#allocation9], 1 }
 0x414   :  { %1190 = vsyncpa [#allocation4], 1 }

</bundles_post_ra>
